<compile_context>
chip_gen: v5e
topology: v5e:2x2
jax: 0.10.0
libtpu: 0.0.40
codegen_flags: <defaults>
</compile_context>

<pallas_src>
import jax
import jax.numpy as jnp
from jax.experimental import pallas as pl
from jax.experimental.pallas import tpu as pltpu


def _round_up(n, m):
    return ((n + m - 1) // m) * m


def _pad2d(a, rows, cols, dtype):
    """Zero-pad `a` (2-D) to (rows, cols) in `dtype`; skip the copy if the
    shape already matches (dtype cast only happens when requested)."""
    if a.dtype != dtype:
        a = a.astype(dtype)
    r, c = a.shape
    if r == rows and c == cols:
        return a
    return jnp.zeros((rows, cols), dtype).at[:r, :c].set(a)


# ---------------------------------------------------------------------------
# Pass 1: partial batch statistics.  For each split `s` of the batch we
# accumulate sum(x) and sum((x - shift)^2) into a (1, D_pad) VMEM scratch and
# spread them over the 8 sublanes of the (8, D_pad) output block (pre-divided
# by 8 so a plain row-sum in the wrapper recovers the partials).  The wrapper
# combines the partials, corrects for zero-padded rows and folds BN into
#   BN(x) == x * scale + offset.
# ---------------------------------------------------------------------------
def bn_stats_kernel(shift_ref, x_ref, sum_ref, sumsq_ref, sum_sc, sumsq_sc):
    i = pl.program_id(1)

    @pl.when(i == 0)
    def _init():
        sum_sc[...] = jnp.zeros_like(sum_sc)
        sumsq_sc[...] = jnp.zeros_like(sumsq_sc)

    x = x_ref[...].astype(jnp.float32)
    d = x - shift_ref[...]
    sum_sc[...] += jnp.sum(x, axis=0, keepdims=True)
    sumsq_sc[...] += jnp.sum(d * d, axis=0, keepdims=True)

    @pl.when(i == pl.num_programs(1) - 1)
    def _finalize():
        sum_ref[...] = jnp.zeros_like(sum_ref) + sum_sc[...] * 0.125
        sumsq_ref[...] = jnp.zeros_like(sumsq_ref) + sumsq_sc[...] * 0.125


def _normalized_features(x_ref, scale_ref, offset_ref):
    x = x_ref[...].astype(jnp.float32)
    f_bn = x * scale_ref[...] + offset_ref[...]           # folded BN affine
    norm = jnp.sqrt(jnp.sum(f_bn * f_bn, axis=1, keepdims=True)) + 1e-8
    # EUP reciprocal (free bundle slot) + one Newton step for f32 accuracy.
    inv = pl.reciprocal(norm, approx=True)
    inv = inv * (2.0 - norm * inv)
    return f_bn * inv


# ---------------------------------------------------------------------------
# Pass 2a: resident-weight path.  Grid over batch tiles only; the whole bf16
# weight (D_pad, C_pad) stays in VMEM (constant index_map).
# ---------------------------------------------------------------------------
def classblock_resident_kernel(x_ref, scale_ref, offset_ref, w_ref, b_ref,
                               logits_ref, f_ref):
    f = _normalized_features(x_ref, scale_ref, offset_ref)
    f_ref[...] = f
    logits = jnp.dot(f.astype(jnp.bfloat16), w_ref[...],
                     preferred_element_type=jnp.float32) + b_ref[...]
    logits_ref[...] = logits


# ---------------------------------------------------------------------------
# Pass 2b: streamed-weight path.  Grid over (batch tiles, class tiles); f is
# computed once per batch tile at j == 0 (f32 written to the resident f output
# block, bf16 copy kept in scratch as the MXU operand).
# ---------------------------------------------------------------------------
def classblock_tiled_kernel(x_ref, scale_ref, offset_ref, w_ref, b_ref,
                            logits_ref, f_ref, f_sc):
    j = pl.program_id(1)

    @pl.when(j == 0)
    def _features():
        f = _normalized_features(x_ref, scale_ref, offset_ref)
        f_ref[...] = f
        f_sc[...] = f.astype(jnp.bfloat16)

    logits = jnp.dot(f_sc[...], w_ref[...],
                     preferred_element_type=jnp.float32) + b_ref[...]
    logits_ref[...] = logits


def class_block_forward(x, gamma, beta, weight, bias):
    """x: (B, D); weight: (C, D) (PyTorch layout); bias: (C,).

    Returns (logits (B, C), f (B, D)), both float32.
    """
    B, D = x.shape
    C = weight.shape[0]
    f32, bf16 = jnp.float32, jnp.bfloat16
    xbytes = jnp.dtype(x.dtype).itemsize
    align = 8 if xbytes >= 4 else 16          # sublane tiling for x's dtype

    D_pad = _round_up(D, 128)
    C_pad = _round_up(C, 128)

    # ---- tile selection / VMEM budgeting ---------------------------------
    tn = 256 if C_pad % 256 == 0 else 128
    resident = (D_pad * C_pad * 2) <= (6 << 20)     # bf16 weight <= 6 MiB

    def pass2_fp(tb_, res_):
        fp = 2 * tb_ * D_pad * xbytes               # x blocks (2 buffers)
        fp += 2 * tb_ * D_pad * 4                   # f output blocks
        fp += 4 * D_pad * 4                         # scale + offset
        if res_:
            fp += 2 * D_pad * C_pad * 2             # resident bf16 weight
            fp += 2 * tb_ * C_pad * 4               # logits blocks
            fp += 2 * C_pad * 4                     # bias
        else:
            fp += 2 * D_pad * tn * 2                # streamed bf16 W tiles
            fp += 2 * tb_ * tn * 4                  # logits tiles
            fp += 2 * tn * 4
            fp += tb_ * D_pad * 2                   # bf16 f scratch
        return fp

    budget = 28 << 20
    tb = min(256, _round_up(B, align))
    while tb > align and pass2_fp(tb, resident) > budget:
        tb = max(align, _round_up(tb // 2, align))
    if resident and pass2_fp(tb, resident) > budget:
        resident = False
        tb = min(256, _round_up(B, align))
        while tb > align and pass2_fp(tb, resident) > budget:
            tb = max(align, _round_up(tb // 2, align))

    B_pad = _round_up(B, tb)
    nb = B_pad // tb

    # Pass-1 tile: k x the pass-2 tile (pure HBM streaming likes big tiles),
    # VMEM-capped, plus a 2-way "parallel" split so v7x's two cores share it.
    k = 1
    for cand in (8, 4, 2):
        if nb % cand == 0:
            k = cand
            break
    while k > 1 and 2 * (k * tb) * D_pad * xbytes > (16 << 20):
        k //= 2
    tb1 = k * tb
    nb1 = nb // k
    nsplit = 2 if (nb1 >= 2 and nb1 % 2 == 0) else 1
    nb_per = nb1 // nsplit

    # ---- wrapper-side padding (skipped when already aligned) --------------
    x_p = _pad2d(x, B_pad, D_pad, x.dtype)                       # native dtype
    gamma_p = _pad2d(gamma.reshape(1, D), 1, D_pad, f32)
    beta_p = _pad2d(beta.reshape(1, D), 1, D_pad, f32)
    wt_p = _pad2d(weight.T, D_pad, C_pad, bf16)                  # (D_pad,C_pad)
    b_p = _pad2d(bias.reshape(1, C), 1, C_pad, f32)

    shift = x_p[0:1, :].astype(f32)        # coarse per-column shift (row 0)

    # ---- Pass 1: partial sums / shifted sums of squares -------------------
    fp1 = 2 * tb1 * D_pad * xbytes + 10 * 8 * D_pad * 4
    vlim1 = int(min(max(fp1 * 5 // 4 + (4 << 20), 32 << 20), 60 << 20))

    sums, sumsqs = pl.pallas_call(
        bn_stats_kernel,
        out_shape=(jax.ShapeDtypeStruct((nsplit * 8, D_pad), f32),
                   jax.ShapeDtypeStruct((nsplit * 8, D_pad), f32)),
        grid=(nsplit, nb_per),
        in_specs=[
            pl.BlockSpec((1, D_pad), lambda s, i: (0, 0)),
            pl.BlockSpec((tb1, D_pad), lambda s, i: (s * nb_per + i, 0)),
        ],
        out_specs=(
            pl.BlockSpec((8, D_pad), lambda s, i: (s, 0)),
            pl.BlockSpec((8, D_pad), lambda s, i: (s, 0)),
        ),
        scratch_shapes=[pltpu.VMEM((1, D_pad), f32),
                        pltpu.VMEM((1, D_pad), f32)],
        compiler_params=pltpu.CompilerParams(
            dimension_semantics=("parallel", "arbitrary"),
            vmem_limit_bytes=vlim1),
    )(shift, x_p)

    # ---- tiny XLA epilogue: combine partials, fold BN into (scale, offset) -
    inv_b = 1.0 / float(B)
    total_sum = jnp.sum(sums, axis=0, keepdims=True)
    total_sq = jnp.sum(sumsqs, axis=0, keepdims=True)
    # zero-padded rows contributed shift^2 each to the shifted sum of squares
    total_sq = total_sq - float(B_pad - B) * (shift * shift)
    mean = total_sum * inv_b
    es = mean - shift
    var = jnp.maximum(total_sq * inv_b - es * es, 0.0)      # biased (training)
    inv_std = jax.lax.rsqrt(var + 1e-5)
    scale = gamma_p * inv_std
    offset = beta_p - mean * scale

    # ---- Pass 2: normalize + L2 + classifier ------------------------------
    vlim2 = int(min(max(pass2_fp(tb, resident) * 5 // 4 + (4 << 20), 32 << 20),
                    60 << 20))

    if resident:
        logits_p, f_p = pl.pallas_call(
            classblock_resident_kernel,
            out_shape=(jax.ShapeDtypeStruct((B_pad, C_pad), f32),
                       jax.ShapeDtypeStruct((B_pad, D_pad), f32)),
            grid=(nb,),
            in_specs=[
                pl.BlockSpec((tb, D_pad), lambda i: (i, 0)),
                pl.BlockSpec((1, D_pad), lambda i: (0, 0)),
                pl.BlockSpec((1, D_pad), lambda i: (0, 0)),
                pl.BlockSpec((D_pad, C_pad), lambda i: (0, 0)),   # resident W
                pl.BlockSpec((1, C_pad), lambda i: (0, 0)),
            ],
            out_specs=(
                pl.BlockSpec((tb, C_pad), lambda i: (i, 0)),
                pl.BlockSpec((tb, D_pad), lambda i: (i, 0)),
            ),
            compiler_params=pltpu.CompilerParams(
                dimension_semantics=("parallel",),
                vmem_limit_bytes=vlim2),
        )(x_p, scale, offset, wt_p, b_p)
    else:
        nc = C_pad // tn
        logits_p, f_p = pl.pallas_call(
            classblock_tiled_kernel,
            out_shape=(jax.ShapeDtypeStruct((B_pad, C_pad), f32),
                       jax.ShapeDtypeStruct((B_pad, D_pad), f32)),
            grid=(nb, nc),
            in_specs=[
                pl.BlockSpec((tb, D_pad), lambda i, j: (i, 0)),
                pl.BlockSpec((1, D_pad), lambda i, j: (0, 0)),
                pl.BlockSpec((1, D_pad), lambda i, j: (0, 0)),
                pl.BlockSpec((D_pad, tn), lambda i, j: (0, j)),   # W tiles
                pl.BlockSpec((1, tn), lambda i, j: (0, j)),
            ],
            out_specs=(
                pl.BlockSpec((tb, tn), lambda i, j: (i, j)),
                pl.BlockSpec((tb, D_pad), lambda i, j: (i, 0)),
            ),
            scratch_shapes=[pltpu.VMEM((tb, D_pad), bf16)],
            compiler_params=pltpu.CompilerParams(
                dimension_semantics=("parallel", "arbitrary"),
                vmem_limit_bytes=vlim2),
        )(x_p, scale, offset, wt_p, b_p)

    logits = logits_p if (B_pad == B and C_pad == C) else logits_p[:B, :C]
    f = f_p if (B_pad == B and D_pad == D) else f_p[:B, :D]
    return logits, f


def _reference(x, gamma, beta, weight, bias):
    mean = jnp.mean(x, axis=0, keepdims=True)
    var = jnp.mean((x - mean) ** 2, axis=0, keepdims=True)
    f = gamma * (x - mean) / jnp.sqrt(var + 1e-5) + beta
    fn = jnp.linalg.norm(f, axis=1, keepdims=True) + 1e-8
    f = f / fn
    return f @ weight.T + bias, f


if __name__ == "__main__":
    key = jax.random.PRNGKey(0)
    B, input_dim, class_num = 8, 32, 16

    k_x, k_g, k_w = jax.random.split(key, 3)
    x = jax.random.normal(k_x, (B, input_dim), dtype=jnp.float32)

    # Deterministic parameter init mirroring the PyTorch init functions:
    # BatchNorm1d: weight ~ N(1.0, 0.02), bias = 0   (weights_init_kaiming)
    gamma = 1.0 + 0.02 * jax.random.normal(k_g, (input_dim,), jnp.float32)
    beta = jnp.zeros((input_dim,), dtype=jnp.float32)
    # Linear: weight ~ N(0, 0.001), bias = 0         (weights_init_classifier)
    weight = 0.001 * jax.random.normal(k_w, (class_num, input_dim),
                                       dtype=jnp.float32)
    bias = jnp.zeros((class_num,), dtype=jnp.float32)

    fwd = jax.jit(class_block_forward)
    logits, f = fwd(x, gamma, beta, weight, bias)
    jax.block_until_ready((logits, f))

    ref_logits, ref_f = _reference(x, gamma, beta, weight, bias)
    assert logits.shape == (B, class_num) and f.shape == (B, input_dim)
    assert jnp.allclose(f, ref_f, atol=1e-5, rtol=1e-4), \
        float(jnp.max(jnp.abs(f - ref_f)))
    # logits use bf16 MXU operands with f32 accumulation
    assert jnp.allclose(logits, ref_logits, atol=1e-4, rtol=1e-3), \
        float(jnp.max(jnp.abs(logits - ref_logits)))

    print("KERNEL_OK")
</pallas_src>

<mosaic_0001>
module attributes {stable_mosaic.version = 11 : i64} {
  func.func @classblock_resident_kernel(%arg0: i32, %arg1: memref<8x128xf32, #tpu.memory_space<vmem>>, %arg2: memref<1x128xf32, #tpu.memory_space<vmem>>, %arg3: memref<1x128xf32, #tpu.memory_space<vmem>>, %arg4: memref<128x128xbf16, #tpu.memory_space<vmem>>, %arg5: memref<1x128xf32, #tpu.memory_space<vmem>>, %arg6: memref<8x128xf32, #tpu.memory_space<vmem>>, %arg7: memref<8x128xf32, #tpu.memory_space<vmem>>) attributes {dimension_semantics = [#tpu.dimension_semantics<parallel>], iteration_bounds = array<i64: 1>, scalar_prefetch = 0 : i64, scratch_operands = 0 : i64, tpu.core_type = #tpu.core_type<tc>, window_params = [{transform_indices = @transform_0, window_bounds = array<i64: 8, 128>}, {pipeline_mode = #tpu.pipeline_mode<synchronous>, transform_indices = @transform_1, window_bounds = array<i64: 1, 128>}, {pipeline_mode = #tpu.pipeline_mode<synchronous>, transform_indices = @transform_2, window_bounds = array<i64: 1, 128>}, {pipeline_mode = #tpu.pipeline_mode<synchronous>, transform_indices = @transform_3, window_bounds = array<i64: 128, 128>}, {pipeline_mode = #tpu.pipeline_mode<synchronous>, transform_indices = @transform_4, window_bounds = array<i64: 1, 128>}, {transform_indices = @transform_5, window_bounds = array<i64: 8, 128>}, {transform_indices = @transform_6, window_bounds = array<i64: 8, 128>}]} {
    %c0 = arith.constant 0 : index
    %c0_0 = arith.constant 0 : index
    %0 = vector.load %arg1[%c0, %c0_0] : memref<8x128xf32, #tpu.memory_space<vmem>>, vector<8x128xf32>
    %c0_1 = arith.constant 0 : index
    %c0_2 = arith.constant 0 : index
    %1 = vector.load %arg2[%c0_1, %c0_2] : memref<1x128xf32, #tpu.memory_space<vmem>>, vector<1x128xf32>
    %2 = vector.broadcast %1 : vector<1x128xf32> to vector<8x128xf32>
    %3 = arith.mulf %0, %2 : vector<8x128xf32>
    %c0_3 = arith.constant 0 : index
    %c0_4 = arith.constant 0 : index
    %4 = vector.load %arg3[%c0_3, %c0_4] : memref<1x128xf32, #tpu.memory_space<vmem>>, vector<1x128xf32>
    %5 = vector.broadcast %4 : vector<1x128xf32> to vector<8x128xf32>
    %6 = arith.addf %3, %5 : vector<8x128xf32>
    %7 = arith.mulf %6, %6 : vector<8x128xf32>
    %cst = arith.constant dense<0.000000e+00> : vector<8xf32>
    %8 = vector.multi_reduction <add>, %7, %cst [1] : vector<8x128xf32> to vector<8xf32>
    %9 = vector.shape_cast %8 : vector<8xf32> to vector<8x1xf32>
    %10 = math.sqrt %9 : vector<8x1xf32>
    %cst_5 = arith.constant 9.99999993E-9 : f32
    %11 = vector.broadcast %cst_5 : f32 to vector<8x1xf32>
    %12 = arith.addf %10, %11 : vector<8x1xf32>
    %13 = tpu.reciprocal %12 {approx = true} : vector<8x1xf32> -> vector<8x1xf32>
    %14 = arith.mulf %12, %13 : vector<8x1xf32>
    %cst_6 = arith.constant 2.000000e+00 : f32
    %15 = vector.broadcast %cst_6 : f32 to vector<8x1xf32>
    %16 = arith.subf %15, %14 : vector<8x1xf32>
    %17 = arith.mulf %13, %16 : vector<8x1xf32>
    %18 = vector.broadcast %17 : vector<8x1xf32> to vector<8x128xf32>
    %19 = arith.mulf %6, %18 : vector<8x128xf32>
    %c0_7 = arith.constant 0 : index
    %c0_8 = arith.constant 0 : index
    %20 = vector.load %arg7[%c0_7, %c0_8] : memref<8x128xf32, #tpu.memory_space<vmem>>, vector<8x128xf32>
    tpu.vector_store %arg7[%c0_7, %c0_8], %19 {strides = array<i32>} : memref<8x128xf32, #tpu.memory_space<vmem>>, vector<8x128xf32>,
    %21 = arith.truncf %19 : vector<8x128xf32> to vector<8x128xbf16>
    %c0_9 = arith.constant 0 : index
    %c0_10 = arith.constant 0 : index
    %22 = vector.load %arg4[%c0_9, %c0_10] : memref<128x128xbf16, #tpu.memory_space<vmem>>, vector<128x128xbf16>
    %cst_11 = arith.constant dense<0.000000e+00> : vector<8x128xf32>
    %23 = tpu.matmul %21, %22, %cst_11 {dimension_numbers = #tpu.dot_dimension_numbers<[1], [0], [0], [1], [0, 0, 1, 1], [], []>} : vector<8x128xbf16>, vector<128x128xbf16>, vector<8x128xf32> -> vector<8x128xf32>
    %c0_12 = arith.constant 0 : index
    %c0_13 = arith.constant 0 : index
    %24 = vector.load %arg5[%c0_12, %c0_13] : memref<1x128xf32, #tpu.memory_space<vmem>>, vector<1x128xf32>
    %25 = vector.broadcast %24 : vector<1x128xf32> to vector<8x128xf32>
    %26 = arith.addf %23, %25 : vector<8x128xf32>
    %c0_14 = arith.constant 0 : index
    %c0_15 = arith.constant 0 : index
    %27 = vector.load %arg6[%c0_14, %c0_15] : memref<8x128xf32, #tpu.memory_space<vmem>>, vector<8x128xf32>
    tpu.vector_store %arg6[%c0_14, %c0_15], %26 {strides = array<i32>} : memref<8x128xf32, #tpu.memory_space<vmem>>, vector<8x128xf32>,
    return
  }
  func.func @transform_0(%arg0: i32) -> (i32, i32) {
    %c0_i32 = arith.constant 0 : i32
    %c0_i32_0 = arith.constant 0 : i32
    return %arg0, %c0_i32 : i32, i32
  }
  func.func @transform_1(%arg0: i32) -> (i32, i32) {
    %c0_i32 = arith.constant 0 : i32
    %c0_i32_0 = arith.constant 0 : i32
    %c0_i32_1 = arith.constant 0 : i32
    return %c0_i32, %c0_i32_0 : i32, i32
  }
  func.func @transform_2(%arg0: i32) -> (i32, i32) {
    %c0_i32 = arith.constant 0 : i32
    %c0_i32_0 = arith.constant 0 : i32
    %c0_i32_1 = arith.constant 0 : i32
    return %c0_i32, %c0_i32_0 : i32, i32
  }
  func.func @transform_3(%arg0: i32) -> (i32, i32) {
    %c0_i32 = arith.constant 0 : i32
    %c0_i32_0 = arith.constant 0 : i32
    %c0_i32_1 = arith.constant 0 : i32
    return %c0_i32, %c0_i32_0 : i32, i32
  }
  func.func @transform_4(%arg0: i32) -> (i32, i32) {
    %c0_i32 = arith.constant 0 : i32
    %c0_i32_0 = arith.constant 0 : i32
    %c0_i32_1 = arith.constant 0 : i32
    return %c0_i32, %c0_i32_0 : i32, i32
  }
  func.func @transform_5(%arg0: i32) -> (i32, i32) {
    %c0_i32 = arith.constant 0 : i32
    %c0_i32_0 = arith.constant 0 : i32
    return %arg0, %c0_i32 : i32, i32
  }
  func.func @transform_6(%arg0: i32) -> (i32, i32) {
    %c0_i32 = arith.constant 0 : i32
    %c0_i32_0 = arith.constant 0 : i32
    return %arg0, %c0_i32 : i32, i32
  }
}

module attributes {stable_mosaic.version = 11 : i64} {
  func.func @bn_stats_kernel(%arg0: i32, %arg1: i32, %arg2: memref<1x128xf32, #tpu.memory_space<vmem>>, %arg3: memref<8x128xf32, #tpu.memory_space<vmem>>, %arg4: memref<8x128xf32, #tpu.memory_space<vmem>>, %arg5: memref<8x128xf32, #tpu.memory_space<vmem>>, %arg6: memref<1x128xf32, #tpu.memory_space<vmem>>, %arg7: memref<1x128xf32, #tpu.memory_space<vmem>>) attributes {dimension_semantics = [#tpu.dimension_semantics<parallel>, #tpu.dimension_semantics<arbitrary>], iteration_bounds = array<i64: 1, 1>, scalar_prefetch = 0 : i64, scratch_operands = 2 : i64, tpu.core_type = #tpu.core_type<tc>, window_params = [{pipeline_mode = #tpu.pipeline_mode<synchronous>, transform_indices = @transform_0, window_bounds = array<i64: 1, 128>}, {transform_indices = @transform_1, window_bounds = array<i64: 8, 128>}, {transform_indices = @transform_2, window_bounds = array<i64: 8, 128>}, {transform_indices = @transform_3, window_bounds = array<i64: 8, 128>}]} {
    %c0_i32 = arith.constant 0 : i32
    %0 = arith.cmpi eq, %arg1, %c0_i32 : i32
    %1 = arith.extui %0 : i1 to i32
    %c0_i32_0 = arith.constant 0 : i32
    %2 = arith.cmpi ne, %1, %c0_i32_0 : i32
    scf.if %2 {
      %cst_15 = arith.constant 0.000000e+00 : f32
      %21 = vector.broadcast %cst_15 : f32 to vector<1x128xf32>
      %c0_16 = arith.constant 0 : index
      %c0_17 = arith.constant 0 : index
      %22 = vector.load %arg6[%c0_16, %c0_17] : memref<1x128xf32, #tpu.memory_space<vmem>>, vector<1x128xf32>
      tpu.vector_store %arg6[%c0_16, %c0_17], %21 {strides = array<i32>} : memref<1x128xf32, #tpu.memory_space<vmem>>, vector<1x128xf32>,
      %cst_18 = arith.constant 0.000000e+00 : f32
      %23 = vector.broadcast %cst_18 : f32 to vector<1x128xf32>
      %c0_19 = arith.constant 0 : index
      %c0_20 = arith.constant 0 : index
      %24 = vector.load %arg7[%c0_19, %c0_20] : memref<1x128xf32, #tpu.memory_space<vmem>>, vector<1x128xf32>
      tpu.vector_store %arg7[%c0_19, %c0_20], %23 {strides = array<i32>} : memref<1x128xf32, #tpu.memory_space<vmem>>, vector<1x128xf32>,
    } else {
    }
    %c0 = arith.constant 0 : index
    %c0_1 = arith.constant 0 : index
    %3 = vector.load %arg3[%c0, %c0_1] : memref<8x128xf32, #tpu.memory_space<vmem>>, vector<8x128xf32>
    %c0_2 = arith.constant 0 : index
    %c0_3 = arith.constant 0 : index
    %4 = vector.load %arg2[%c0_2, %c0_3] : memref<1x128xf32, #tpu.memory_space<vmem>>, vector<1x128xf32>
    %5 = vector.broadcast %4 : vector<1x128xf32> to vector<8x128xf32>
    %6 = arith.subf %3, %5 : vector<8x128xf32>
    %c0_4 = arith.constant 0 : index
    %c0_5 = arith.constant 0 : index
    %7 = vector.load %arg6[%c0_4, %c0_5] : memref<1x128xf32, #tpu.memory_space<vmem>>, vector<1x128xf32>
    %cst = arith.constant dense<0.000000e+00> : vector<128xf32>
    %8 = vector.multi_reduction <add>, %3, %cst [0] : vector<8x128xf32> to vector<128xf32>
    %9 = vector.shape_cast %8 : vector<128xf32> to vector<1x128xf32>
    %10 = arith.addf %7, %9 : vector<1x128xf32>
    %c0_6 = arith.constant 0 : index
    %c0_7 = arith.constant 0 : index
    %11 = vector.load %arg6[%c0_6, %c0_7] : memref<1x128xf32, #tpu.memory_space<vmem>>, vector<1x128xf32>
    tpu.vector_store %arg6[%c0_6, %c0_7], %10 {strides = array<i32>} : memref<1x128xf32, #tpu.memory_space<vmem>>, vector<1x128xf32>,
    %c0_8 = arith.constant 0 : index
    %c0_9 = arith.constant 0 : index
    %12 = vector.load %arg7[%c0_8, %c0_9] : memref<1x128xf32, #tpu.memory_space<vmem>>, vector<1x128xf32>
    %13 = arith.mulf %6, %6 : vector<8x128xf32>
    %cst_10 = arith.constant dense<0.000000e+00> : vector<128xf32>
    %14 = vector.multi_reduction <add>, %13, %cst_10 [0] : vector<8x128xf32> to vector<128xf32>
    %15 = vector.shape_cast %14 : vector<128xf32> to vector<1x128xf32>
    %16 = arith.addf %12, %15 : vector<1x128xf32>
    %c0_11 = arith.constant 0 : index
    %c0_12 = arith.constant 0 : index
    %17 = vector.load %arg7[%c0_11, %c0_12] : memref<1x128xf32, #tpu.memory_space<vmem>>, vector<1x128xf32>
    tpu.vector_store %arg7[%c0_11, %c0_12], %16 {strides = array<i32>} : memref<1x128xf32, #tpu.memory_space<vmem>>, vector<1x128xf32>,
    %c0_i32_13 = arith.constant 0 : i32
    %18 = arith.cmpi eq, %arg1, %c0_i32_13 : i32
    %19 = arith.extui %18 : i1 to i32
    %c0_i32_14 = arith.constant 0 : i32
    %20 = arith.cmpi ne, %19, %c0_i32_14 : i32
    scf.if %20 {
      %cst_15 = arith.constant 0.000000e+00 : f32
      %21 = vector.broadcast %cst_15 : f32 to vector<8x128xf32>
      %c0_16 = arith.constant 0 : index
      %c0_17 = arith.constant 0 : index
      %22 = vector.load %arg6[%c0_16, %c0_17] : memref<1x128xf32, #tpu.memory_space<vmem>>, vector<1x128xf32>
      %cst_18 = arith.constant 1.250000e-01 : f32
      %23 = vector.broadcast %cst_18 : f32 to vector<1x128xf32>
      %24 = arith.mulf %22, %23 : vector<1x128xf32>
      %25 = vector.broadcast %24 : vector<1x128xf32> to vector<8x128xf32>
      %26 = arith.addf %21, %25 : vector<8x128xf32>
      %c0_19 = arith.constant 0 : index
      %c0_20 = arith.constant 0 : index
      %27 = vector.load %arg4[%c0_19, %c0_20] : memref<8x128xf32, #tpu.memory_space<vmem>>, vector<8x128xf32>
      tpu.vector_store %arg4[%c0_19, %c0_20], %26 {strides = array<i32>} : memref<8x128xf32, #tpu.memory_space<vmem>>, vector<8x128xf32>,
      %cst_21 = arith.constant 0.000000e+00 : f32
      %28 = vector.broadcast %cst_21 : f32 to vector<8x128xf32>
      %c0_22 = arith.constant 0 : index
      %c0_23 = arith.constant 0 : index
      %29 = vector.load %arg7[%c0_22, %c0_23] : memref<1x128xf32, #tpu.memory_space<vmem>>, vector<1x128xf32>
      %cst_24 = arith.constant 1.250000e-01 : f32
      %30 = vector.broadcast %cst_24 : f32 to vector<1x128xf32>
      %31 = arith.mulf %29, %30 : vector<1x128xf32>
      %32 = vector.broadcast %31 : vector<1x128xf32> to vector<8x128xf32>
      %33 = arith.addf %28, %32 : vector<8x128xf32>
      %c0_25 = arith.constant 0 : index
      %c0_26 = arith.constant 0 : index
      %34 = vector.load %arg5[%c0_25, %c0_26] : memref<8x128xf32, #tpu.memory_space<vmem>>, vector<8x128xf32>
      tpu.vector_store %arg5[%c0_25, %c0_26], %33 {strides = array<i32>} : memref<8x128xf32, #tpu.memory_space<vmem>>, vector<8x128xf32>,
    } else {
    }
    return
  }
  func.func @transform_0(%arg0: i32, %arg1: i32) -> (i32, i32) {
    %c0_i32 = arith.constant 0 : i32
    %c0_i32_0 = arith.constant 0 : i32
    %c0_i32_1 = arith.constant 0 : i32
    return %c0_i32, %c0_i32_0 : i32, i32
  }
  func.func @transform_1(%arg0: i32, %arg1: i32) -> (i32, i32) {
    %c1_i32 = arith.constant 1 : i32
    %0 = arith.muli %arg0, %c1_i32 : i32
    %1 = arith.addi %0, %arg1 : i32
    %c0_i32 = arith.constant 0 : i32
    %c0_i32_0 = arith.constant 0 : i32
    return %1, %c0_i32 : i32, i32
  }
  func.func @transform_2(%arg0: i32, %arg1: i32) -> (i32, i32) {
    %c0_i32 = arith.constant 0 : i32
    %c0_i32_0 = arith.constant 0 : i32
    return %arg0, %c0_i32 : i32, i32
  }
  func.func @transform_3(%arg0: i32, %arg1: i32) -> (i32, i32) {
    %c0_i32 = arith.constant 0 : i32
    %c0_i32_0 = arith.constant 0 : i32
    return %arg0, %c0_i32 : i32, i32
  }
}

</mosaic_0001>

<bundles_post_ra>
// kernel: class_block_forward.3
= control target key start
LH: loop header
LB: loop body
LE: loop exit
PB: predicated region body
PF: predicated region fallthrough
CT: control target
= control target key end

     0   :  { %12 = vsyncpa [#allocation3], 0  ;;  %s352_s0 = inlined_call_operand.vmem [shape: f32[8,128], index: 0, kind: input, shape index: {}]   ;;  %s353_s1 = inlined_call_operand.vmem [shape: f32[1,128], index: 1, kind: input, shape index: {}]   ;;  %s354_s2 = inlined_call_operand.vmem [shape: f32[1,128], index: 2, kind: input, shape index: {}]   ;;  %s355_s3 = inlined_call_operand.vmem [shape: bf16[128,128], index: 3, kind: input, shape index: {}]   ;;  %s356_s4 = inlined_call_operand.vmem [shape: f32[1,128], index: 4, kind: input, shape index: {}]   ;;  %s357_s5 = inlined_call_operand.hbm [shape: f32[8,128], index: 5, kind: output, shape index: {0}]   ;;  %s358_s6 = inlined_call_operand.hbm [shape: f32[8,128], index: 6, kind: output, shape index: {1}]  }
   0x1   :  { %v24_v0 = vld [vmem:[%s352_s0] sm:$0xff] }
   0x2   :  { %v214_v1 = vld [vmem:[%s353_s1] ss:$0 sm:$0xff] }
   0x3   :  { %v215_v2 = vld [vmem:[%s354_s2] ss:$0 sm:$0xff]  ;;  %v29_v3 = vmul.f32 %v214_v1, %v24_v0 }
   0x4   :  { %13 = vsyncpa [#allocation5], 0  ;;  %v211_v6 = vld [vmem:[%s355_s3 + $0x38] sm:$0xff]  ;;  %v210_v7 = vld [vmem:[%s355_s3 + $0x30] sm:$0xff]  ;;  %s158_s19 = sshll.u32 %s358_s6, 4  ;;  %s274_s22 = smov [#allocation2]   ;;  %s159_s19 = int_to_ptr.hbm [resolvable:$true] %s158_s19 }
   0x5   :  { %v34_v4 = vadd.f32 %v215_v2, %v29_v3  ;;  %126 = vmatpush.bf16.msra.mxu0 %v211_v6  ;;  %v209_v8 = vld [vmem:[%s355_s3 + $0x28] sm:$0xff]  ;;  %v208_v9 = vld [vmem:[%s355_s3 + $0x20] sm:$0xff]  ;;  %v207_v10 = vld [vmem:[%s355_s3 + $0x18] sm:$0xff]  ;;  %s145_s23 = sshll.u32 %s274_s22, 4  ;;  %s147_s26 = sshll.u32 %s357_s5, 4  ;;  %s146_s23 = int_to_ptr.vmem [resolvable:$true] %s145_s23  ;;  %s148_s26 = int_to_ptr.hbm [resolvable:$true] %s147_s26 }
   0x6   :  { %v206_v11 = vld [vmem:[%s355_s3 + $0x10] sm:$0xff]  ;;  %v205_v12 = vld [vmem:[%s355_s3 + $0x8] sm:$0xff]  ;;  %v204_v14 = vld [vmem:[%s355_s3] sm:$0xff]  ;;  %s273_s3 = smov [#allocation4]  }
   0x7   :  { %v35_v5 = vmul.f32 %v34_v4, %v34_v4  ;;  %s156_s16 = sshll.u32 %s273_s3, 4  ;;  %v216_v32 = vld [vmem:[%s356_s4] ss:$0 sm:$0xff]  ;;  %s157_s16 = int_to_ptr.vmem [resolvable:$true] %s156_s16 }
   0x9   :  { %36 = vadd.xlane.f32.xlu0 %v35_v5  ;;  %127 = vmatpush.bf16.msra.mxu0 %v210_v7 }
   0xd   :  { %128 = vmatpush.bf16.msra.mxu0 %v209_v8 }
  0x11   :  { %129 = vmatpush.bf16.msra.mxu0 %v208_v9 }
  0x15   :  { %130 = vmatpush.bf16.msra.mxu0 %v207_v10 }
  0x19   :  { %131 = vmatpush.bf16.msra.mxu0 %v206_v11 }
  0x1d   :  { %132 = vmatpush.bf16.msra.mxu0 %v205_v12 }
  0x21   :  { %133 = vmatpush.bf16.msra.mxu0 %v204_v14 }
  0x7c   :  { %v37_v13 = vpop.xlane.xlu0 %36 }
  0x7d   :  { %217 = vrsqrt.f32 %v37_v13  ;;  %vm45_vm0 = vcmp.eq.f32.partialorder %v37_v13, inf  ;;  %v48_v22 = vand.u32 2147483648, %v37_v13  ;;  %vm47_vm1 = vcmp.eq.f32.partialorder %v37_v13, 0.0 }
  0x83   :  { %v218_v15 = vpop.eup %217 }
  0x84   :  { %v39_v16 = vmul.f32 %v218_v15, %v37_v13 }
  0x86   :  { %v40_v17 = vmul.f32 %v218_v15, %v39_v16 }
  0x88   :  { %v41_v18 = vmul.f32 0.5, %v40_v17 }
  0x8a   :  { %v42_v19 = vsub.f32 1.5, %v41_v18 }
  0x8c   :  { %v43_v20 = vmul.f32 %v218_v15, %v42_v19 }
  0x8e   :  { %v44_v21 = vmul.f32 %v43_v20, %v37_v13 }
  0x90   :  { %v46_v23 = vsel %vm45_vm0, %v37_v13, %v44_v21 }
  0x91   :  { %v49_v24 = vsel %vm47_vm1, %v48_v22, %v46_v23 }
  0x92   :  { %v50_v25 = vadd.f32 1e-08, %v49_v24 }
  0x94   :  { %219 = vrcp.f32 %v50_v25 }
  0x9a   :  { %v220_v26 = vpop.eup %219 }
  0x9b   :  { %v52_v27 = vmul.f32 %v220_v26, %v50_v25 }
  0x9d   :  { %v53_v28 = vsub.f32 2.0, %v52_v27 }
  0x9f   :  { %v54_v29 = vmul.f32 %v220_v26, %v53_v28 }
  0xa1   :  { %v55_v30 = vmul.f32 %v54_v29, %v34_v4 }
  0xa3   :  { %v57_v31 = vpack.c.bf16 %v55_v30, %v55_v30  ;;  %56 = vst [vmem:[#allocation4] sm:$0xff] %v55_v30 }
  0xa4   :  { %161 = dma.vmem_to_hbm [thread:$0]  %s157_s16, 128, %s159_s19, [#allocation5]  }
  0xa5   :  { %134 = vmatmul.bf16.vlgmr.msra.gmra.mxu0 %v57_v31 }
 0x122   :  { %v135_v33 = vpop.f32.mrf.mxu0 }
 0x123   :  { %v136_v34 = vadd.f32 %v216_v32, %v135_v33 }
 0x125   :  { %139 = vst [vmem:[#allocation2] sm:$0xff] %v136_v34 }
 0x126   :  { %150 = dma.vmem_to_hbm [thread:$0]  %s146_s23, 128, %s148_s26, [#allocation3]  }
 0x12a   :  { %v137_v35 = vpop.f32.mrf.mxu0 }
 0x12b   :  { %269 = dma.done.wait [#allocation3], 128  }
 0x12c   :  { %270 = vsyncadd [#allocation3], 4294967168 }
 0x12d   :  { %271 = dma.done.wait [#allocation5], 128  }
 0x12e   :  { %272 = vsyncadd [#allocation5], 4294967168 }
 0x12f   :  { %170 = vsyncpa [#allocation3], 1 }
 0x130   :  { %171 = vsyncpa [#allocation5], 1 }

// kernel: class_block_forward.2
= control target key start
LH: loop header
LB: loop body
LE: loop exit
PB: predicated region body
PF: predicated region fallthrough
CT: control target
= control target key end

     0   :  { %v94_v0 = vmov 0.0   ;;  %s127_s1 = inlined_call_operand.vmem [shape: f32[8,128], index: 1, kind: input, shape index: {}]   ;;  %s128_s0 = inlined_call_operand.vmem [shape: f32[1,128], index: 0, kind: input, shape index: {}]   ;;  %s129_s2 = inlined_call_operand.vmem [shape: f32[8,128], index: 2, kind: output, shape index: {0}]   ;;  %s130_s3 = inlined_call_operand.vmem [shape: f32[8,128], index: 3, kind: output, shape index: {1}]  }
   0x1   :  { %34 = vst [vmem:[#allocation2] sm:$0x1] %v94_v0  ;;  %v36_v1 = vld [vmem:[%s127_s1] sm:$0xff] }
   0x2   :  { %35 = vst [vmem:[#allocation3] sm:$0x1] %v94_v0  ;;  %v43_v2 = vrot.slane %v36_v1, 4  ;;  %v93_v3 = vld [vmem:[%s128_s0] ss:$0 sm:$0xff] }
   0x3   :  { %v41_v5 = vsub.f32 %v36_v1, %v93_v3 }
   0x4   :  { %v44_v4 = vadd.f32 %v43_v2, %v36_v1 }
   0x5   :  { %v52_v7 = vmul.f32 %v41_v5, %v41_v5 }
   0x6   :  { %v45_v6 = vrot.slane %v44_v4, 2 }
   0x7   :  { %v53_v9 = vrot.slane %v52_v7, 4 }
   0x8   :  { %v46_v8 = vadd.f32 %v45_v6, %v44_v4  ;;  %v42_v12 = vld [vmem:[#allocation2] sm:$0x1] }
   0x9   :  { %v54_v11 = vadd.f32 %v53_v9, %v52_v7  ;;  %v51_v18 = vld [vmem:[#allocation3] sm:$0x1] }
   0xa   :  { %v47_v10 = vrot.slane %v46_v8, 1 }
   0xb   :  { %v55_v14 = vrot.slane %v54_v11, 2 }
   0xc   :  { %v48_v13 = vadd.f32 %v47_v10, %v46_v8 }
   0xd   :  { %v56_v16 = vadd.f32 %v55_v14, %v54_v11 }
   0xe   :  { %v49_v15 = vadd.f32 %v48_v13, %v42_v12 }
   0xf   :  { %v57_v17 = vrot.slane %v56_v16, 1 }
  0x10   :  { %50 = vst [vmem:[#allocation2] sm:$0x1] %v49_v15 }
  0x11   :  { %v58_v19 = vadd.f32 %v57_v17, %v56_v16 }
  0x13   :  { %v59_v20 = vadd.f32 %v58_v19, %v51_v18 }
  0x15   :  { %60 = vst [vmem:[#allocation3] sm:$0x1] %v59_v20 }
  0x17   :  { %v64_v21 = vld [vmem:[#allocation2] sm:$0x1] }
  0x18   :  { %v65_v22 = vmul.f32 0.125, %v64_v21 }
  0x1a   :  { %v67_v23 = vperm.slane %v65_v22, 0 }
  0x1c   :  { %70 = vst [vmem:[%s129_s2] sm:$0xff] %v67_v23  ;;  %v71_v24 = vld [vmem:[#allocation3] sm:$0x1] }
  0x1d   :  { %v72_v25 = vmul.f32 0.125, %v71_v24 }
  0x1f   :  { %v74_v26 = vperm.slane %v72_v25, 0 }
  0x21   :  { %77 = vst [vmem:[%s130_s3] sm:$0xff] %v74_v26 }

</bundles_post_ra>
